<compile_context>
chip_gen: v5e
topology: v5e:2x2
jax: 0.10.0
libtpu: 0.0.40
codegen_flags: <defaults>
</compile_context>

<pallas_src>
import jax
import jax.numpy as jnp
from jax.experimental import pallas as pl
from jax.experimental.pallas import tpu as pltpu

LANE = 128  # pad the hidden widths to a full vreg lane width


def mlp_kernel(x_ref,
               w1_ref, b1_ref,
               w2_ref, b2_ref,
               w3_ref, b3_ref,
               w4_ref, b4_ref,
               o_ref):
    # All dots accumulate in f32; operand dtype (bf16 or f32) is whatever the
    # wrapper staged into VMEM.  Intermediates are re-cast to the weight dtype
    # so the MXU runs at its native rate in the bf16 configuration.
    h = jnp.dot(x_ref[...], w1_ref[...], preferred_element_type=jnp.float32)
    h = jnp.maximum(h + b1_ref[...], 0.0).astype(w2_ref.dtype)
    h = jnp.dot(h, w2_ref[...], preferred_element_type=jnp.float32)
    h = jnp.maximum(h + b2_ref[...], 0.0).astype(w3_ref.dtype)
    h = jnp.dot(h, w3_ref[...], preferred_element_type=jnp.float32)
    h = jnp.maximum(h + b3_ref[...], 0.0).astype(w4_ref.dtype)
    # Final layer: (tb, 128) @ (128, num_classes) -> narrow f32 store.
    h = jnp.dot(h, w4_ref[...], preferred_element_type=jnp.float32)
    o_ref[...] = (h + b4_ref[...]).astype(o_ref.dtype)


def _pick_batch_tile(B, in_features, num_classes, x_itemsize):
    """Largest sublane-friendly batch tile that (a) gives >= 4 grid steps when
    B allows it (2 TensorCores on v7x each get >= 2 pipelined steps), (b) is
    capped at 4096 rows, and (c) keeps the double-buffered streamed blocks
    plus live intermediates well under v5e's 16 MiB scoped-VMEM default."""
    tb = min(4096, max(16, -(-B // 4)))
    # 2 buffers for the streamed x block, 2 for the narrow f32 output block,
    # plus ~3 live (tb, 128) f32 intermediates inside the kernel body.
    per_row = 2 * in_features * x_itemsize + 2 * num_classes * 4 + 3 * LANE * 4
    budget = 6 * 1024 * 1024
    tb = min(tb, max(16, budget // per_row))
    return -(-tb // 16) * 16  # multiple of 16 (bf16 sublane packing)


def _pad_params(params, compute_dtype):
    """Zero-pad the hidden widths up to LANE (exact: see header).

    The output layer keeps its true column count (num_classes) so the kernel
    can store a narrow, unpadded result.  Weights are cast to `compute_dtype`;
    biases stay f32 (added to the f32 accumulator)."""
    w1, b1 = params["fc1"]
    w2, b2 = params["fc2"]
    w3, b3 = params["fc3"]
    w4, b4 = params["output"]
    for w in (w1, w2, w3):
        assert w.shape[1] <= LANE, "hidden width exceeds one lane group"

    w1p = jnp.pad(w1, ((0, 0), (0, LANE - w1.shape[1]))).astype(compute_dtype)
    w2p = jnp.pad(w2, ((0, LANE - w2.shape[0]), (0, LANE - w2.shape[1]))).astype(compute_dtype)
    w3p = jnp.pad(w3, ((0, LANE - w3.shape[0]), (0, LANE - w3.shape[1]))).astype(compute_dtype)
    w4p = jnp.pad(w4, ((0, LANE - w4.shape[0]), (0, 0))).astype(compute_dtype)

    b1p = jnp.pad(b1, (0, LANE - b1.shape[0])).reshape(1, LANE).astype(jnp.float32)
    b2p = jnp.pad(b2, (0, LANE - b2.shape[0])).reshape(1, LANE).astype(jnp.float32)
    b3p = jnp.pad(b3, (0, LANE - b3.shape[0])).reshape(1, LANE).astype(jnp.float32)
    b4p = b4.reshape(1, -1).astype(jnp.float32)
    return (w1p, b1p, w2p, b2p, w3p, b3p, w4p, b4p)


def nn_forward(x, params, *, batch_tile=None, compute_dtype=jnp.bfloat16):
    """Forward pass of NN.

    x: [B, in_features] float32.  params: dict name -> (w[in, out], b[out]).
    compute_dtype: jnp.bfloat16 (default, fast; ~1e-3 relative error vs a pure
    float32 reference) or jnp.float32 for bit-faithful-to-f32 numerics.
    """
    B, in_features = x.shape
    num_classes = params["output"][0].shape[1]

    w1, b1, w2, b2, w3, b3, w4, b4 = _pad_params(params, compute_dtype)

    # x is the dominant HBM read stream; stage it in compute_dtype.
    x = x.astype(compute_dtype)

    tb = (batch_tile if batch_tile is not None
          else _pick_batch_tile(B, in_features, num_classes, x.dtype.itemsize))
    padded_B = pl.cdiv(B, tb) * tb
    if padded_B != B:
        x = jnp.pad(x, ((0, padded_B - B), (0, 0)))
    grid = (padded_B // tb,)

    def full_spec(shape):
        return pl.BlockSpec(shape, lambda i: (0,) * len(shape))

    # MXU work actually issued (lane-padded widths), not the logical 16/8 net.
    flops = 2 * padded_B * (in_features * LANE + LANE * LANE + LANE * LANE
                            + LANE * num_classes)
    weight_bytes = sum(int(a.size) * a.dtype.itemsize
                       for a in (w1, b1, w2, b2, w3, b3, w4, b4))
    bytes_accessed = (padded_B * in_features * x.dtype.itemsize   # x read
                      + padded_B * num_classes * 4                # narrow f32 out
                      + weight_bytes)

    out = pl.pallas_call(
        mlp_kernel,
        out_shape=jax.ShapeDtypeStruct((padded_B, num_classes), jnp.float32),
        grid_spec=pltpu.PrefetchScalarGridSpec(
            num_scalar_prefetch=0,
            grid=grid,
            in_specs=[
                pl.BlockSpec((tb, in_features), lambda i: (i, 0)),
                full_spec(w1.shape), full_spec(b1.shape),
                full_spec(w2.shape), full_spec(b2.shape),
                full_spec(w3.shape), full_spec(b3.shape),
                full_spec(w4.shape), full_spec(b4.shape),
            ],
            out_specs=pl.BlockSpec((tb, num_classes), lambda i: (i, 0)),
        ),
        compiler_params=pltpu.CompilerParams(
            dimension_semantics=("parallel",)),
        cost_estimate=pl.CostEstimate(
            flops=flops, transcendentals=0, bytes_accessed=bytes_accessed),
    )(x, w1, b1, w2, b2, w3, b3, w4, b4)

    # Only batch-pad rows (if any) need dropping; the output is already
    # num_classes wide, so this slice is tiny (and absent when tb | B).
    return out[:B] if padded_B != B else out


def init_params(key, in_features, num_classes):
    """Deterministic init mimicking PyTorch nn.Linear default U(-1/sqrt(fan_in), +)."""
    dims = [(in_features, 16), (16, 16), (16, 8), (8, num_classes)]
    names = ["fc1", "fc2", "fc3", "output"]
    params = {}
    for name, (fan_in, fan_out) in zip(names, dims):
        key, kw, kb = jax.random.split(key, 3)
        bound = 1.0 / (fan_in ** 0.5)
        w = jax.random.uniform(kw, (fan_in, fan_out), jnp.float32, -bound, bound)
        b = jax.random.uniform(kb, (fan_out,), jnp.float32, -bound, bound)
        params[name] = (w, b)
    return params


def reference_forward(x, params, compute_dtype=jnp.float32):
    """Pure-JAX reference.  With compute_dtype=bf16 it mirrors the kernel's
    rounding points (x, weights and intermediate activations in bf16, f32
    accumulation, f32 biases)."""
    def rnd(a):
        return a.astype(compute_dtype).astype(jnp.float32)

    h = rnd(x)
    for name in ("fc1", "fc2", "fc3"):
        w, b = params[name]
        h = jnp.maximum(
            jnp.dot(h, rnd(w), precision=jax.lax.Precision.HIGHEST) + b, 0.0)
        h = rnd(h)
    w, b = params["output"]
    return jnp.dot(h, rnd(w), precision=jax.lax.Precision.HIGHEST) + b


if __name__ == "__main__":
    key = jax.random.PRNGKey(0)
    B, in_features, num_classes = 64, 32, 10

    kx, kp = jax.random.split(key)
    x = jax.random.normal(kx, (B, in_features), jnp.float32)
    params = init_params(kp, in_features, num_classes)

    out = nn_forward(x, params)            # default bf16 compute, f32 accumulate
    out = jax.block_until_ready(out)
    assert out.shape == (B, num_classes)

    # Tight check against a reference that rounds at the same points as the kernel.
    ref_bf16 = reference_forward(x, params, compute_dtype=jnp.bfloat16)
    assert jnp.allclose(out, ref_bf16, atol=1e-3, rtol=1e-3), \
        float(jnp.max(jnp.abs(out - ref_bf16)))

    # Loose sanity check against the pure float32 reference (bf16 rounding error).
    ref_f32 = reference_forward(x, params, compute_dtype=jnp.float32)
    assert jnp.allclose(out, ref_f32, atol=1e-1, rtol=5e-2), \
        float(jnp.max(jnp.abs(out - ref_f32)))

    print("KERNEL_OK")
</pallas_src>

<mosaic_0001>
module attributes {stable_mosaic.version = 11 : i64} {
  func.func @mlp_kernel(%arg0: i32, %arg1: memref<16x32xbf16, #tpu.memory_space<vmem>>, %arg2: memref<32x128xbf16, #tpu.memory_space<vmem>>, %arg3: memref<1x128xf32, #tpu.memory_space<vmem>>, %arg4: memref<128x128xbf16, #tpu.memory_space<vmem>>, %arg5: memref<1x128xf32, #tpu.memory_space<vmem>>, %arg6: memref<128x128xbf16, #tpu.memory_space<vmem>>, %arg7: memref<1x128xf32, #tpu.memory_space<vmem>>, %arg8: memref<128x10xbf16, #tpu.memory_space<vmem>>, %arg9: memref<1x10xf32, #tpu.memory_space<vmem>>, %arg10: memref<16x10xf32, #tpu.memory_space<vmem>>) attributes {dimension_semantics = [#tpu.dimension_semantics<parallel>], iteration_bounds = array<i64: 4>, scalar_prefetch = 0 : i64, scratch_operands = 0 : i64, tpu.core_type = #tpu.core_type<tc>, window_params = [{transform_indices = @transform_0, window_bounds = array<i64: 16, 32>}, {pipeline_mode = #tpu.pipeline_mode<synchronous>, transform_indices = @transform_1, window_bounds = array<i64: 32, 128>}, {pipeline_mode = #tpu.pipeline_mode<synchronous>, transform_indices = @transform_2, window_bounds = array<i64: 1, 128>}, {pipeline_mode = #tpu.pipeline_mode<synchronous>, transform_indices = @transform_3, window_bounds = array<i64: 128, 128>}, {pipeline_mode = #tpu.pipeline_mode<synchronous>, transform_indices = @transform_4, window_bounds = array<i64: 1, 128>}, {pipeline_mode = #tpu.pipeline_mode<synchronous>, transform_indices = @transform_5, window_bounds = array<i64: 128, 128>}, {pipeline_mode = #tpu.pipeline_mode<synchronous>, transform_indices = @transform_6, window_bounds = array<i64: 1, 128>}, {pipeline_mode = #tpu.pipeline_mode<synchronous>, transform_indices = @transform_7, window_bounds = array<i64: 128, 10>}, {pipeline_mode = #tpu.pipeline_mode<synchronous>, transform_indices = @transform_8, window_bounds = array<i64: 1, 10>}, {transform_indices = @transform_9, window_bounds = array<i64: 16, 10>}]} {
    %c0 = arith.constant 0 : index
    %c0_0 = arith.constant 0 : index
    %0 = vector.load %arg1[%c0, %c0_0] : memref<16x32xbf16, #tpu.memory_space<vmem>>, vector<16x32xbf16>
    %c0_1 = arith.constant 0 : index
    %c0_2 = arith.constant 0 : index
    %1 = vector.load %arg2[%c0_1, %c0_2] : memref<32x128xbf16, #tpu.memory_space<vmem>>, vector<32x128xbf16>
    %cst = arith.constant dense<0.000000e+00> : vector<16x128xf32>
    %2 = tpu.matmul %0, %1, %cst {dimension_numbers = #tpu.dot_dimension_numbers<[1], [0], [0], [1], [0, 0, 1, 1], [], []>} : vector<16x32xbf16>, vector<32x128xbf16>, vector<16x128xf32> -> vector<16x128xf32>
    %c0_3 = arith.constant 0 : index
    %c0_4 = arith.constant 0 : index
    %3 = vector.load %arg3[%c0_3, %c0_4] : memref<1x128xf32, #tpu.memory_space<vmem>>, vector<1x128xf32>
    %4 = vector.broadcast %3 : vector<1x128xf32> to vector<16x128xf32>
    %5 = arith.addf %2, %4 : vector<16x128xf32>
    %cst_5 = arith.constant 0.000000e+00 : f32
    %6 = vector.broadcast %cst_5 : f32 to vector<16x128xf32>
    %7 = arith.maximumf %5, %6 : vector<16x128xf32>
    %8 = arith.truncf %7 : vector<16x128xf32> to vector<16x128xbf16>
    %c0_6 = arith.constant 0 : index
    %c0_7 = arith.constant 0 : index
    %9 = vector.load %arg4[%c0_6, %c0_7] : memref<128x128xbf16, #tpu.memory_space<vmem>>, vector<128x128xbf16>
    %cst_8 = arith.constant dense<0.000000e+00> : vector<16x128xf32>
    %10 = tpu.matmul %8, %9, %cst_8 {dimension_numbers = #tpu.dot_dimension_numbers<[1], [0], [0], [1], [0, 0, 1, 1], [], []>} : vector<16x128xbf16>, vector<128x128xbf16>, vector<16x128xf32> -> vector<16x128xf32>
    %c0_9 = arith.constant 0 : index
    %c0_10 = arith.constant 0 : index
    %11 = vector.load %arg5[%c0_9, %c0_10] : memref<1x128xf32, #tpu.memory_space<vmem>>, vector<1x128xf32>
    %12 = vector.broadcast %11 : vector<1x128xf32> to vector<16x128xf32>
    %13 = arith.addf %10, %12 : vector<16x128xf32>
    %cst_11 = arith.constant 0.000000e+00 : f32
    %14 = vector.broadcast %cst_11 : f32 to vector<16x128xf32>
    %15 = arith.maximumf %13, %14 : vector<16x128xf32>
    %16 = arith.truncf %15 : vector<16x128xf32> to vector<16x128xbf16>
    %c0_12 = arith.constant 0 : index
    %c0_13 = arith.constant 0 : index
    %17 = vector.load %arg6[%c0_12, %c0_13] : memref<128x128xbf16, #tpu.memory_space<vmem>>, vector<128x128xbf16>
    %cst_14 = arith.constant dense<0.000000e+00> : vector<16x128xf32>
    %18 = tpu.matmul %16, %17, %cst_14 {dimension_numbers = #tpu.dot_dimension_numbers<[1], [0], [0], [1], [0, 0, 1, 1], [], []>} : vector<16x128xbf16>, vector<128x128xbf16>, vector<16x128xf32> -> vector<16x128xf32>
    %c0_15 = arith.constant 0 : index
    %c0_16 = arith.constant 0 : index
    %19 = vector.load %arg7[%c0_15, %c0_16] : memref<1x128xf32, #tpu.memory_space<vmem>>, vector<1x128xf32>
    %20 = vector.broadcast %19 : vector<1x128xf32> to vector<16x128xf32>
    %21 = arith.addf %18, %20 : vector<16x128xf32>
    %cst_17 = arith.constant 0.000000e+00 : f32
    %22 = vector.broadcast %cst_17 : f32 to vector<16x128xf32>
    %23 = arith.maximumf %21, %22 : vector<16x128xf32>
    %24 = arith.truncf %23 : vector<16x128xf32> to vector<16x128xbf16>
    %c0_18 = arith.constant 0 : index
    %c0_19 = arith.constant 0 : index
    %25 = vector.load %arg8[%c0_18, %c0_19] : memref<128x10xbf16, #tpu.memory_space<vmem>>, vector<128x10xbf16>
    %cst_20 = arith.constant dense<0.000000e+00> : vector<16x10xf32>
    %26 = tpu.matmul %24, %25, %cst_20 {dimension_numbers = #tpu.dot_dimension_numbers<[1], [0], [0], [1], [0, 0, 1, 1], [], []>} : vector<16x128xbf16>, vector<128x10xbf16>, vector<16x10xf32> -> vector<16x10xf32>
    %c0_21 = arith.constant 0 : index
    %c0_22 = arith.constant 0 : index
    %27 = vector.load %arg9[%c0_21, %c0_22] : memref<1x10xf32, #tpu.memory_space<vmem>>, vector<1x10xf32>
    %28 = vector.broadcast %27 : vector<1x10xf32> to vector<16x10xf32>
    %29 = arith.addf %26, %28 : vector<16x10xf32>
    %c0_23 = arith.constant 0 : index
    %c0_24 = arith.constant 0 : index
    %30 = vector.load %arg10[%c0_23, %c0_24] : memref<16x10xf32, #tpu.memory_space<vmem>>, vector<16x10xf32>
    tpu.vector_store %arg10[%c0_23, %c0_24], %29 {strides = array<i32>} : memref<16x10xf32, #tpu.memory_space<vmem>>, vector<16x10xf32>,
    return
  }
  func.func @transform_0(%arg0: i32) -> (i32, i32) {
    %c0_i32 = arith.constant 0 : i32
    %c0_i32_0 = arith.constant 0 : i32
    return %arg0, %c0_i32 : i32, i32
  }
  func.func @transform_1(%arg0: i32) -> (i32, i32) {
    %c0_i32 = arith.constant 0 : i32
    %c0_i32_0 = arith.constant 0 : i32
    %c0_i32_1 = arith.constant 0 : i32
    return %c0_i32, %c0_i32_0 : i32, i32
  }
  func.func @transform_2(%arg0: i32) -> (i32, i32) {
    %c0_i32 = arith.constant 0 : i32
    %c0_i32_0 = arith.constant 0 : i32
    %c0_i32_1 = arith.constant 0 : i32
    return %c0_i32, %c0_i32_0 : i32, i32
  }
  func.func @transform_3(%arg0: i32) -> (i32, i32) {
    %c0_i32 = arith.constant 0 : i32
    %c0_i32_0 = arith.constant 0 : i32
    %c0_i32_1 = arith.constant 0 : i32
    return %c0_i32, %c0_i32_0 : i32, i32
  }
  func.func @transform_4(%arg0: i32) -> (i32, i32) {
    %c0_i32 = arith.constant 0 : i32
    %c0_i32_0 = arith.constant 0 : i32
    %c0_i32_1 = arith.constant 0 : i32
    return %c0_i32, %c0_i32_0 : i32, i32
  }
  func.func @transform_5(%arg0: i32) -> (i32, i32) {
    %c0_i32 = arith.constant 0 : i32
    %c0_i32_0 = arith.constant 0 : i32
    %c0_i32_1 = arith.constant 0 : i32
    return %c0_i32, %c0_i32_0 : i32, i32
  }
  func.func @transform_6(%arg0: i32) -> (i32, i32) {
    %c0_i32 = arith.constant 0 : i32
    %c0_i32_0 = arith.constant 0 : i32
    %c0_i32_1 = arith.constant 0 : i32
    return %c0_i32, %c0_i32_0 : i32, i32
  }
  func.func @transform_7(%arg0: i32) -> (i32, i32) {
    %c0_i32 = arith.constant 0 : i32
    %c0_i32_0 = arith.constant 0 : i32
    %c0_i32_1 = arith.constant 0 : i32
    return %c0_i32, %c0_i32_0 : i32, i32
  }
  func.func @transform_8(%arg0: i32) -> (i32, i32) {
    %c0_i32 = arith.constant 0 : i32
    %c0_i32_0 = arith.constant 0 : i32
    %c0_i32_1 = arith.constant 0 : i32
    return %c0_i32, %c0_i32_0 : i32, i32
  }
  func.func @transform_9(%arg0: i32) -> (i32, i32) {
    %c0_i32 = arith.constant 0 : i32
    %c0_i32_0 = arith.constant 0 : i32
    return %arg0, %c0_i32 : i32, i32
  }
}

</mosaic_0001>

<bundles_post_ra>
// kernel: tpu_custom_call.1
= control target key start
LH: loop header
LB: loop body
LE: loop exit
PB: predicated region body
PF: predicated region fallthrough
CT: control target
= control target key end

     0   :  { %14 = vsyncpa [#allocation3], 0  ;;  %s994_s30 = smov 0   ;;  %s1084_s0 = inlined_call_operand.vmem [shape: bf16[64,32], index: 0, kind: input, shape index: {}]   ;;  %s1085_s1 = inlined_call_operand.vmem [shape: bf16[32,128], index: 1, kind: input, shape index: {}]   ;;  %s1086_s2 = inlined_call_operand.vmem [shape: f32[1,128], index: 2, kind: input, shape index: {}]   ;;  %s1087_s3 = inlined_call_operand.vmem [shape: bf16[128,128], index: 3, kind: input, shape index: {}]   ;;  %s1088_s4 = inlined_call_operand.vmem [shape: f32[1,128], index: 4, kind: input, shape index: {}]   ;;  %s1089_s5 = inlined_call_operand.hbm [shape: bf16[128,128], index: 5, kind: input, shape index: {}]   ;;  %s1090_s6 = inlined_call_operand.vmem [shape: f32[1,128], index: 6, kind: input, shape index: {}]   ;;  %s1091_s7 = inlined_call_operand.vmem [shape: bf16[128,10], index: 7, kind: input, shape index: {}]   ;;  %s1092_s8 = inlined_call_operand.vmem [shape: f32[1,10], index: 8, kind: input, shape index: {}]   ;;  %s1093_s9 = inlined_call_operand.vmem [shape: f32[64,10], index: 9, kind: output, shape index: {}]  }
   0x1 LB: > { %s268_s12 = sshll.u32 %s1089_s5, 4  ;;  %s725_s13 = sadd.s32 4294967295, %s939_s30   ;;  %s939_s30 = sphi %s994_s30, %s20_s30   ;;  %s269_s12 = int_to_ptr.hbm [resolvable:$true] %s268_s12 }
   0x2   : > { %p727_p0 = scmp.ge.s32.totalorder %s939_s30, 1  ;;  %p245_p1 = scmp.lt.s32.totalorder %s939_s30, 5 }
   0x3   : > { %p882_p2 = scmp.eq.s32.totalorder %s725_s13, 0  ;;  %s941_s14 = smov [#allocation2]  }
   0x4   : > { %p246_p3 = pnand %p727_p0, %p245_p1  ;;  %s270_s15 = sshll.u32 %s941_s14, 4  ;;  %s271_s15 = int_to_ptr.vmem [resolvable:$true] %s270_s15 }
   0x5   : > { %s942_s16 = smov 64   ;;  %s943_s17 = smov 4  }
   0x6   : > { %p878_p4 = pneg %p246_p3  ;;  %304 = sbr.rel (%p246_p3) target bundleno = 589 (0x24d), region = 56 }
   0x8   : > { %p879_p5 = pnand %p882_p2, %p878_p4 }
   0xa   : > { %881 = dma.hbm_to_vmem [thread:$0]  (!%p879_p5), %s269_s12, 1024, %s271_s15, [#allocation3], %s942_s16, %s942_s16, %s943_s17  }
   0xb   : > { %934 = dma.done.wait (%p882_p2), [#allocation3], 1024  }
   0xc   : > { %936 = vsyncadd (%p882_p2), [#allocation3], 4294966272  ;;  %s732_s18 = sshll.u32 %s725_s13, 1  ;;  %v849_v0 = vld [vmem:[%s1085_s1 + $0x8] sm:$0xff]  ;;  %v857_v1 = vld [vmem:[%s1087_s3 + $0x38] sm:$0xff]  ;;  %vm381_vm0 = vcmask 261120  }
   0xd   : > { %p342_p6 = scmp.lt.s32.totalorder %s732_s18, 7  ;;  %391 = vmatpush.bf16.msra.mxu0 %v849_v0  ;;  %v848_v2 = vld [vmem:[%s1085_s1] sm:$0xff]  ;;  %v856_v3 = vld [vmem:[%s1087_s3 + $0x30] sm:$0xff]  ;;  %470 = vmatpush.bf16.msra.mxu1 %v857_v1  ;;  %v855_v5 = vld [vmem:[%s1087_s3 + $0x28] sm:$0xff]  ;;  %vm654_vm1 = vcmask 80896  }
   0xe   : > { %v854_v6 = vld [vmem:[%s1087_s3 + $0x20] sm:$0xff]  ;;  %v853_v7 = vld [vmem:[%s1087_s3 + $0x18] sm:$0xff]  ;;  %v852_v8 = vld [vmem:[%s1087_s3 + $0x10] sm:$0xff] }
   0xf   : > { %s1095_s18 = smov (!%p342_p6, %s732_s18), 7  ;;  %v851_v9 = vld [vmem:[%s1087_s3 + $0x8] sm:$0xff]  ;;  %v850_v10 = vld [vmem:[%s1087_s3] sm:$0xff]  ;;  %v865_v11 = vld [vmem:[#allocation2 + $0x38] sm:$0xff] }
  0x10   : > { %s733_s19 = sshll.u32 %s1095_s18, 2  ;;  %555 = vmatpush.bf16.msra.mxu2 %v865_v11  ;;  %v864_v12 = vld [vmem:[#allocation2 + $0x30] sm:$0xff]  ;;  %v863_v13 = vld [vmem:[#allocation2 + $0x28] sm:$0xff]  ;;  %v862_v14 = vld [vmem:[#allocation2 + $0x20] sm:$0xff]  ;;  %s735_s27 = sshll.u32 %s1095_s18, 3 }
  0x11   : > { %s345_s28 = scalar_lea.vmem %s1084_s0, %s733_s19  ;;  %392 = vmatpush.bf16.msra.mxu0 %v848_v2  ;;  %471 = vmatpush.bf16.msra.mxu1 %v856_v3  ;;  %v895_v16 = vld [vmem:[%s1086_s2] ss:$0 sm:$0xff]  ;;  %v861_v23 = vld [vmem:[#allocation2 + $0x18] sm:$0xff]  ;;  %v860_v24 = vld [vmem:[#allocation2 + $0x10] sm:$0xff]  ;;  %s351_s12 = scalar_lea.vmem %s1093_s9, %s735_s27 }
  0x12   : > { %v847_v4 = vld [vmem:[%s345_s28] sm:$0xff]  ;;  %v859_v25 = vld [vmem:[#allocation2 + $0x8] sm:$0xff]  ;;  %v873_v27 = vld [vmem:[%s1091_s7 + $0x38] sm:$0xff] }
  0x13   : > { %v858_v26 = vld [vmem:[#allocation2] sm:$0xff]  ;;  %640 = vmatpush.bf16.msra.mxu3 %v873_v27  ;;  %v872_v28 = vld [vmem:[%s1091_s7 + $0x30] sm:$0xff]  ;;  %v871_v29 = vld [vmem:[%s1091_s7 + $0x28] sm:$0xff] }
  0x14   : > { %748 = vmatmul.msk.bf16.vlgmr.msra.gmra.mxu0 %vm381_vm0, %v847_v4  ;;  %556 = vmatpush.bf16.msra.mxu2 %v864_v12  ;;  %v870_v30 = vld [vmem:[%s1091_s7 + $0x20] sm:$0xff]  ;;  %v869_v39 = vld [vmem:[%s1091_s7 + $0x18] sm:$0xff]  ;;  %v868_v40 = vld [vmem:[%s1091_s7 + $0x10] sm:$0xff] }
  0x15   : > { %472 = vmatpush.bf16.msra.mxu1 %v855_v5  ;;  %v896_v32 = vld [vmem:[%s1088_s4] ss:$0 sm:$0xff]  ;;  %v867_v41 = vld [vmem:[%s1091_s7 + $0x8] sm:$0xff] }
  0x16   : > { %v866_v42 = vld [vmem:[%s1091_s7] sm:$0xff] }
  0x17   : > { %641 = vmatpush.bf16.msra.mxu3 %v872_v28  ;;  %v897_v44 = vld [vmem:[%s1090_s6] ss:$0 sm:$0xff] }
  0x18   : > { %557 = vmatpush.bf16.msra.mxu2 %v863_v13  ;;  %v898_v51 = vld [vmem:[%s1092_s8] ss:$0 sm:$0xff] }
  0x19   : > { %473 = vmatpush.bf16.msra.mxu1 %v854_v6 }
  0x1b   : > { %642 = vmatpush.bf16.msra.mxu3 %v871_v29 }
  0x1c   : > { %558 = vmatpush.bf16.msra.mxu2 %v862_v14 }
  0x1d   : > { %474 = vmatpush.bf16.msra.mxu1 %v853_v7 }
  0x1f   : > { %643 = vmatpush.bf16.msra.mxu3 %v870_v30 }
  0x20   : > { %559 = vmatpush.bf16.msra.mxu2 %v861_v23 }
  0x21   : > { %475 = vmatpush.bf16.msra.mxu1 %v852_v8 }
  0x23   : > { %644 = vmatpush.bf16.msra.mxu3 %v869_v39 }
  0x24   : > { %560 = vmatpush.bf16.msra.mxu2 %v860_v24 }
  0x25   : > { %476 = vmatpush.bf16.msra.mxu1 %v851_v9 }
  0x27   : > { %645 = vmatpush.bf16.msra.mxu3 %v868_v40 }
  0x28   : > { %561 = vmatpush.bf16.msra.mxu2 %v859_v25 }
  0x29   : > { %477 = vmatpush.bf16.msra.mxu1 %v850_v10 }
  0x2b   : > { %646 = vmatpush.bf16.msra.mxu3 %v867_v41 }
  0x2c   : > { %562 = vmatpush.bf16.msra.mxu2 %v858_v26 }
  0x2f   : > { %647 = vmatpush.bf16.msra.mxu3 %v866_v42 }
  0x91   : > { %v394_v15 = vpop.f32.mrf.mxu0 }
  0x92   : > { %v395_v17 = vadd.f32 %v895_v16, %v394_v15 }
  0x94   : > { %v399_v20 = vmax.f32 %v395_v17, 0.0 }
  0x99   : > { %v396_v18 = vpop.f32.mrf.mxu0 }
  0x9a   : > { %v397_v19 = vadd.f32 %v895_v16, %v396_v18 }
  0x9c   : > { %v400_v21 = vmax.f32 %v397_v19, 0.0 }
  0x9e   : > { %v401_v22 = vpack.c.bf16 %v400_v21, %v399_v20 }
  0xa0   : > { %478 = vmatmul.bf16.vlgmr.msra.gmra.mxu1 %v401_v22 }
 0x11d   : > { %v479_v31 = vpop.f32.mrf.mxu1 }
 0x11e   : > { %v480_v33 = vadd.f32 %v896_v32, %v479_v31 }
 0x120   : > { %v484_v36 = vmax.f32 %v480_v33, 0.0 }
 0x125   : > { %v481_v34 = vpop.f32.mrf.mxu1 }
 0x126   : > { %v482_v35 = vadd.f32 %v896_v32, %v481_v34 }
 0x128   : > { %v485_v37 = vmax.f32 %v482_v35, 0.0 }
 0x12a   : > { %v486_v38 = vpack.c.bf16 %v485_v37, %v484_v36 }
 0x12c   : > { %563 = vmatmul.bf16.vlgmr.msra.gmra.mxu2 %v486_v38 }
 0x1af   : > { %v564_v43 = vpop.f32.mrf.mxu2 }
 0x1b0   : > { %v565_v45 = vadd.f32 %v897_v44, %v564_v43 }
 0x1b2   : > { %v569_v48 = vmax.f32 %v565_v45, 0.0 }
 0x1b7   : > { %v566_v46 = vpop.f32.mrf.mxu2 }
 0x1b8   : > { %v567_v47 = vadd.f32 %v897_v44, %v566_v46 }
 0x1ba   : > { %v570_v49 = vmax.f32 %v567_v47, 0.0 }
 0x1bc   : > { %v571_v50 = vpack.c.bf16 %v570_v49, %v569_v48 }
 0x1be   : > { %648 = vmatmul.bf16.vlgmr.msra.gmra.mxu3 %v571_v50 }
 0x241   : > { %v649_v52 = vpop.f32.mrf.mxu3 }
 0x242   : > { %v650_v53 = vadd.f32 %v898_v51, %v649_v52 }
 0x244   : > { %655 = vst.msk [vmem:[%s351_s12] sm:$0xff] %vm654_vm1, %v650_v53 }
 0x249   : > { %v651_v54 = vpop.f32.mrf.mxu3 }
 0x24a   : > { %v652_v55 = vadd.f32 %v898_v51, %v651_v54 }
 0x24c   : > { %656 = vst.msk [vmem:[%s351_s12 + $0x8] sm:$0xff] %vm654_vm1, %v652_v55 }
 0x24d PF: > { %s20_s30 = sadd.s32 1, %s939_s30  }
 0x24e   : > { %p17_p7 = scmp.ge.s32.totalorder %s20_s30, 6  }
 0x250   :  { %19 = sbr.rel (!%p17_p7) target bundleno = 1 (0x1), region = 91 }
 0x255   :  { %679 = vsyncpa [#allocation3], 1 }
 0x256   :  { %681 = vsyncpa [#allocation3 + $0x1], 1 }

</bundles_post_ra>
